<compile_context>
chip_gen: v5e
topology: v5e:2x2
jax: 0.10.0
libtpu: 0.0.40
codegen_flags: <defaults>
</compile_context>

<pallas_src>
import functools

import jax
import jax.numpy as jnp
from jax.experimental import pallas as pl
from jax.experimental.pallas import tpu as pltpu

EPS = 1e-5  # PyTorch InstanceNorm2d default


def _expanding_block_kernel(x_ref, w_ref, o_ref, *, W):
    """One batch image per grid step.

    x_ref: (Cin, L_pad) f32 — image flattened to H*W on the lane axis with a zero
           tail of >= W+1 entries (supplies the out-of-range "row below" = 0).
    w_ref: (4, 4*Cout, Cin) f32 — class-fused taps for input shifts {0, 1, W, W+1};
           row blocks are output parity classes [(0,0), (0,1), (1,0), (1,1)].
    o_ref: (4*Cout, H*W) f32 — normalized + ReLU'd output, parity-class-major.
    """
    four_cout, HW = o_ref.shape
    cout = four_cout // 4
    cin = x_ref.shape[0]

    # Four shifted copies of the input: x[m,n], x[m,n+1], x[m+1,n], x[m+1,n+1].
    s00 = x_ref[:, 0:HW]
    s01 = x_ref[:, 1:1 + HW]
    s10 = x_ref[:, W:W + HW]
    s11 = x_ref[:, W + 1:W + 1 + HW]

    # Column n = W-1 has no "n+1" neighbour; the zero tail already handles the
    # missing "m+1" row, so only a column mask is needed.
    lane = jax.lax.broadcasted_iota(jnp.int32, (cin, HW), 1)
    keep_col = (lane % W) != (W - 1)
    s01 = jnp.where(keep_col, s01, 0.0)
    s11 = jnp.where(keep_col, s11, 0.0)

    # Transposed conv = 4 accumulated MXU matmuls (MRB accumulate on v7x,
    # 3 small VPU adds on v5e/v6e).  K = Cin, N = H*W (lane-dense).
    y = jnp.dot(w_ref[0], s00, preferred_element_type=jnp.float32)
    y = y + jnp.dot(w_ref[1], s01, preferred_element_type=jnp.float32)
    y = y + jnp.dot(w_ref[2], s10, preferred_element_type=jnp.float32)
    y = y + jnp.dot(w_ref[3], s11, preferred_element_type=jnp.float32)

    # InstanceNorm (no affine): per output channel over all 2H*2W output pixels,
    # i.e. over the lane axis and over the 4 parity-class row blocks.
    row_sum = jnp.sum(y, axis=1, keepdims=True)        # (4*Cout, 1)
    row_sq = jnp.sum(y * y, axis=1, keepdims=True)     # (4*Cout, 1)
    ch_sum = (row_sum[0:cout] + row_sum[cout:2 * cout]
              + row_sum[2 * cout:3 * cout] + row_sum[3 * cout:4 * cout])
    ch_sq = (row_sq[0:cout] + row_sq[cout:2 * cout]
             + row_sq[2 * cout:3 * cout] + row_sq[3 * cout:4 * cout])
    inv_n = 1.0 / (4.0 * HW)
    mean = ch_sum * inv_n                              # (Cout, 1)
    var = ch_sq * inv_n - mean * mean                  # biased variance
    inv_std = jax.lax.rsqrt(var + EPS)

    mean_b = jnp.concatenate([mean] * 4, axis=0)       # (4*Cout, 1)
    inv_b = jnp.concatenate([inv_std] * 4, axis=0)

    # Normalize + ReLU, lane-dense store.
    o_ref[...] = jnp.maximum((y - mean_b) * inv_b, 0.0)


def expanding_block(x, w):
    """Forward pass of ExpandingBlock (default use_bn=True path).

    x: (N, Cin, H, W) f32
    w: (Cin, Cout, 3, 3) f32 — PyTorch ConvTranspose2d weight layout (Cout = Cin//2).
    Returns (N, Cout, 2H, 2W) = ReLU(InstanceNorm(ConvTranspose2d_{k3,s2,p1,op1}(x))).
    Conv bias omitted (cancelled exactly by the following InstanceNorm).
    """
    N, Cin, H, W = x.shape
    Cout = w.shape[1]
    HW = H * W
    # Zero tail >= W+1 supplies out-of-range "row below" values; pad lanes up to
    # a multiple of 128 so the input block stays lane-dense.
    L_pad = ((HW + W + 1 + 127) // 128) * 128
    xf = jnp.pad(x.reshape(N, Cin, HW), ((0, 0), (0, 0), (0, L_pad - HW)))

    # Class-fused, MXU-ready weights.  w_all[k] multiplies the input shifted by
    # {0, 1, W, W+1}; its 4 row blocks are the output parity classes
    # [(oy%2,ox%2) = (0,0), (0,1), (1,0), (1,1)].
    def tap(ky, kx):
        return jnp.transpose(w[:, :, ky, kx])          # (Cout, Cin)

    z = jnp.zeros((Cout, Cin), w.dtype)
    w_all = jnp.stack([
        jnp.concatenate([tap(1, 1), tap(1, 2), tap(2, 1), tap(2, 2)], axis=0),
        jnp.concatenate([z,         tap(1, 0), z,         tap(2, 0)], axis=0),
        jnp.concatenate([z,         z,         tap(0, 1), tap(0, 2)], axis=0),
        jnp.concatenate([z,         z,         z,         tap(0, 0)], axis=0),
    ], axis=0)                                         # (4, 4*Cout, Cin)

    y = pl.pallas_call(
        functools.partial(_expanding_block_kernel, W=W),
        out_shape=jax.ShapeDtypeStruct((N, 4 * Cout, HW), x.dtype),
        grid=(N,),
        in_specs=[
            pl.BlockSpec((None, Cin, L_pad), lambda n: (n, 0, 0)),
            pl.BlockSpec((4, 4 * Cout, Cin), lambda n: (0, 0, 0)),
        ],
        out_specs=pl.BlockSpec((None, 4 * Cout, HW), lambda n: (n, 0, 0)),
        compiler_params=pltpu.CompilerParams(
            dimension_semantics=("parallel",)),
    )(xf, w_all)

    # Depth-to-space: parity-class-major (N, 4*Cout, H*W) -> NCHW (N, Cout, 2H, 2W).
    y = y.reshape(N, 2, 2, Cout, H, W)
    return jnp.transpose(y, (0, 3, 4, 1, 5, 2)).reshape(N, Cout, 2 * H, 2 * W)


def reference_forward(x, w, b):
    """Pure-JAX reference mirroring PyTorch (ConvTranspose2d WITH bias -> IN -> ReLU)."""
    # ConvTranspose2d(k=3, s=2, p=1, op=1) as an lhs-dilated convolution with the
    # spatially-flipped, (out, in)-transposed kernel.
    wt = jnp.transpose(w, (1, 0, 2, 3))[:, :, ::-1, ::-1]
    y = jax.lax.conv_general_dilated(
        x, wt, window_strides=(1, 1), padding=((1, 2), (1, 2)),
        lhs_dilation=(2, 2), dimension_numbers=("NCHW", "OIHW", "NCHW"))
    y = y + b[None, :, None, None]
    m = jnp.mean(y, axis=(2, 3), keepdims=True)
    v = jnp.mean((y - m) ** 2, axis=(2, 3), keepdims=True)
    y = (y - m) * jax.lax.rsqrt(v + EPS)
    return jnp.maximum(y, 0.0)


if __name__ == "__main__":
    N, C, H, W = 2, 4, 16, 16          # input_channels = 4 -> output channels = 2
    Cout = C // 2

    key = jax.random.PRNGKey(0)
    kx, kw, kb = jax.random.split(key, 3)

    bound = 1.0 / (C * 3 * 3) ** 0.5
    w = jax.random.uniform(kw, (C, Cout, 3, 3), jnp.float32, -bound, bound)
    b = jax.random.uniform(kb, (Cout,), jnp.float32, -bound, bound)
    x = jax.random.normal(kx, (N, C, H, W), jnp.float32)

    out = jax.block_until_ready(expanding_block(x, w))
    ref = jax.block_until_ready(reference_forward(x, w, b))

    assert out.shape == (N, Cout, 2 * H, 2 * W), out.shape
    err = jnp.max(jnp.abs(out - ref))
    assert jnp.allclose(out, ref, atol=1e-4, rtol=1e-4), f"max abs err {err}"

    print("KERNEL_OK")
</pallas_src>

<mosaic_0001>
module attributes {stable_mosaic.version = 11 : i64} {
  func.func @_expanding_block_kernel(%arg0: i32, %arg1: memref<1x4x384xf32, #tpu.memory_space<vmem>>, %arg2: memref<4x8x4xf32, #tpu.memory_space<vmem>>, %arg3: memref<1x8x256xf32, #tpu.memory_space<vmem>>) attributes {dimension_semantics = [#tpu.dimension_semantics<parallel>], iteration_bounds = array<i64: 2>, scalar_prefetch = 0 : i64, scratch_operands = 0 : i64, tpu.core_type = #tpu.core_type<tc>, window_params = [{transform_indices = @transform_0, window_bounds = array<i64: 1, 4, 384>}, {pipeline_mode = #tpu.pipeline_mode<synchronous>, transform_indices = @transform_1, window_bounds = array<i64: 4, 8, 4>}, {transform_indices = @transform_2, window_bounds = array<i64: 1, 8, 256>}]} {
    %c0 = arith.constant 0 : index
    %c0_0 = arith.constant 0 : index
    %c0_1 = arith.constant 0 : index
    %0 = vector.load %arg1[%c0, %c0_0, %c0_1] : memref<1x4x384xf32, #tpu.memory_space<vmem>>, vector<1x4x256xf32>
    %1 = vector.shape_cast %0 : vector<1x4x256xf32> to vector<4x256xf32>
    %c0_2 = arith.constant 0 : index
    %c0_3 = arith.constant 0 : index
    %c1 = arith.constant 1 : index
    %2 = vector.load %arg1[%c0_2, %c0_3, %c1] : memref<1x4x384xf32, #tpu.memory_space<vmem>>, vector<1x4x256xf32>
    %3 = vector.shape_cast %2 : vector<1x4x256xf32> to vector<4x256xf32>
    %c0_4 = arith.constant 0 : index
    %c0_5 = arith.constant 0 : index
    %c16 = arith.constant 16 : index
    %4 = vector.load %arg1[%c0_4, %c0_5, %c16] : memref<1x4x384xf32, #tpu.memory_space<vmem>>, vector<1x4x256xf32>
    %5 = vector.shape_cast %4 : vector<1x4x256xf32> to vector<4x256xf32>
    %c0_6 = arith.constant 0 : index
    %c0_7 = arith.constant 0 : index
    %c17 = arith.constant 17 : index
    %6 = vector.load %arg1[%c0_6, %c0_7, %c17] : memref<1x4x384xf32, #tpu.memory_space<vmem>>, vector<1x4x256xf32>
    %7 = vector.shape_cast %6 : vector<1x4x256xf32> to vector<4x256xf32>
    %8 = tpu.iota {dimensions = array<i32: 1>} : vector<4x256xi32>
    %c16_i32 = arith.constant 16 : i32
    %c0_i32 = arith.constant 0 : i32
    %9 = arith.cmpi eq, %c16_i32, %c0_i32 : i32
    %c1_i32 = arith.constant 1 : i32
    %10 = arith.select %9, %c1_i32, %c16_i32 : i32
    %11 = vector.broadcast %10 : i32 to vector<4x256xi32>
    %12 = arith.remsi %8, %11 : vector<4x256xi32>
    %c0_i32_8 = arith.constant 0 : i32
    %13 = vector.broadcast %c0_i32_8 : i32 to vector<4x256xi32>
    %14 = arith.cmpi ne, %12, %13 : vector<4x256xi32>
    %c0_i32_9 = arith.constant 0 : i32
    %15 = vector.broadcast %c0_i32_9 : i32 to vector<4x256xi32>
    %16 = arith.cmpi slt, %12, %15 : vector<4x256xi32>
    %c0_i32_10 = arith.constant 0 : i32
    %17 = arith.cmpi slt, %10, %c0_i32_10 : i32
    %18 = vector.broadcast %17 : i1 to vector<4x256xi1>
    %19 = vector.broadcast %18 : vector<4x256xi1> to vector<4x256xi1>
    %20 = arith.xori %16, %19 : vector<4x256xi1>
    %21 = arith.andi %20, %14 : vector<4x256xi1>
    %22 = vector.broadcast %10 : i32 to vector<4x256xi32>
    %23 = arith.addi %12, %22 : vector<4x256xi32>
    %24 = arith.select %21, %23, %12 : vector<4x256xi1>, vector<4x256xi32>
    %c15_i32 = arith.constant 15 : i32
    %25 = vector.broadcast %c15_i32 : i32 to vector<4x256xi32>
    %26 = arith.cmpi ne, %24, %25 : vector<4x256xi32>
    %cst = arith.constant 0.000000e+00 : f32
    %27 = vector.broadcast %cst : f32 to vector<4x256xf32>
    %28 = arith.select %26, %3, %27 : vector<4x256xi1>, vector<4x256xf32>
    %cst_11 = arith.constant 0.000000e+00 : f32
    %29 = vector.broadcast %cst_11 : f32 to vector<4x256xf32>
    %30 = arith.select %26, %7, %29 : vector<4x256xi1>, vector<4x256xf32>
    %c0_12 = arith.constant 0 : index
    %c0_13 = arith.constant 0 : index
    %c0_14 = arith.constant 0 : index
    %31 = vector.load %arg2[%c0_12, %c0_13, %c0_14] : memref<4x8x4xf32, #tpu.memory_space<vmem>>, vector<1x8x4xf32>
    %32 = vector.shape_cast %31 : vector<1x8x4xf32> to vector<8x4xf32>
    %cst_15 = arith.constant dense<0.000000e+00> : vector<8x256xf32>
    %33 = tpu.matmul %32, %1, %cst_15 {dimension_numbers = #tpu.dot_dimension_numbers<[1], [0], [0], [1], [0, 0, 1, 1], [], []>} : vector<8x4xf32>, vector<4x256xf32>, vector<8x256xf32> -> vector<8x256xf32>
    %c1_16 = arith.constant 1 : index
    %c0_17 = arith.constant 0 : index
    %c0_18 = arith.constant 0 : index
    %34 = vector.load %arg2[%c1_16, %c0_17, %c0_18] : memref<4x8x4xf32, #tpu.memory_space<vmem>>, vector<1x8x4xf32>
    %35 = vector.shape_cast %34 : vector<1x8x4xf32> to vector<8x4xf32>
    %cst_19 = arith.constant dense<0.000000e+00> : vector<8x256xf32>
    %36 = tpu.matmul %35, %28, %cst_19 {dimension_numbers = #tpu.dot_dimension_numbers<[1], [0], [0], [1], [0, 0, 1, 1], [], []>} : vector<8x4xf32>, vector<4x256xf32>, vector<8x256xf32> -> vector<8x256xf32>
    %37 = arith.addf %33, %36 : vector<8x256xf32>
    %c2 = arith.constant 2 : index
    %c0_20 = arith.constant 0 : index
    %c0_21 = arith.constant 0 : index
    %38 = vector.load %arg2[%c2, %c0_20, %c0_21] : memref<4x8x4xf32, #tpu.memory_space<vmem>>, vector<1x8x4xf32>
    %39 = vector.shape_cast %38 : vector<1x8x4xf32> to vector<8x4xf32>
    %cst_22 = arith.constant dense<0.000000e+00> : vector<8x256xf32>
    %40 = tpu.matmul %39, %5, %cst_22 {dimension_numbers = #tpu.dot_dimension_numbers<[1], [0], [0], [1], [0, 0, 1, 1], [], []>} : vector<8x4xf32>, vector<4x256xf32>, vector<8x256xf32> -> vector<8x256xf32>
    %41 = arith.addf %37, %40 : vector<8x256xf32>
    %c3 = arith.constant 3 : index
    %c0_23 = arith.constant 0 : index
    %c0_24 = arith.constant 0 : index
    %42 = vector.load %arg2[%c3, %c0_23, %c0_24] : memref<4x8x4xf32, #tpu.memory_space<vmem>>, vector<1x8x4xf32>
    %43 = vector.shape_cast %42 : vector<1x8x4xf32> to vector<8x4xf32>
    %cst_25 = arith.constant dense<0.000000e+00> : vector<8x256xf32>
    %44 = tpu.matmul %43, %30, %cst_25 {dimension_numbers = #tpu.dot_dimension_numbers<[1], [0], [0], [1], [0, 0, 1, 1], [], []>} : vector<8x4xf32>, vector<4x256xf32>, vector<8x256xf32> -> vector<8x256xf32>
    %45 = arith.addf %41, %44 : vector<8x256xf32>
    %cst_26 = arith.constant dense<0.000000e+00> : vector<8xf32>
    %46 = vector.multi_reduction <add>, %45, %cst_26 [1] : vector<8x256xf32> to vector<8xf32>
    %47 = vector.shape_cast %46 : vector<8xf32> to vector<8x1xf32>
    %48 = arith.mulf %45, %45 : vector<8x256xf32>
    %cst_27 = arith.constant dense<0.000000e+00> : vector<8xf32>
    %49 = vector.multi_reduction <add>, %48, %cst_27 [1] : vector<8x256xf32> to vector<8xf32>
    %50 = vector.shape_cast %49 : vector<8xf32> to vector<8x1xf32>
    %51 = vector.extract_strided_slice %47 {offsets = [0, 0], sizes = [2, 1], strides = [1, 1]} : vector<8x1xf32> to vector<2x1xf32>
    %52 = vector.extract_strided_slice %47 {offsets = [2, 0], sizes = [2, 1], strides = [1, 1]} : vector<8x1xf32> to vector<2x1xf32>
    %53 = arith.addf %51, %52 : vector<2x1xf32>
    %54 = vector.extract_strided_slice %47 {offsets = [4, 0], sizes = [2, 1], strides = [1, 1]} : vector<8x1xf32> to vector<2x1xf32>
    %55 = arith.addf %53, %54 : vector<2x1xf32>
    %56 = vector.extract_strided_slice %47 {offsets = [6, 0], sizes = [2, 1], strides = [1, 1]} : vector<8x1xf32> to vector<2x1xf32>
    %57 = arith.addf %55, %56 : vector<2x1xf32>
    %58 = vector.extract_strided_slice %50 {offsets = [0, 0], sizes = [2, 1], strides = [1, 1]} : vector<8x1xf32> to vector<2x1xf32>
    %59 = vector.extract_strided_slice %50 {offsets = [2, 0], sizes = [2, 1], strides = [1, 1]} : vector<8x1xf32> to vector<2x1xf32>
    %60 = arith.addf %58, %59 : vector<2x1xf32>
    %61 = vector.extract_strided_slice %50 {offsets = [4, 0], sizes = [2, 1], strides = [1, 1]} : vector<8x1xf32> to vector<2x1xf32>
    %62 = arith.addf %60, %61 : vector<2x1xf32>
    %63 = vector.extract_strided_slice %50 {offsets = [6, 0], sizes = [2, 1], strides = [1, 1]} : vector<8x1xf32> to vector<2x1xf32>
    %64 = arith.addf %62, %63 : vector<2x1xf32>
    %cst_28 = arith.constant 9.765625E-4 : f32
    %65 = vector.broadcast %cst_28 : f32 to vector<2x1xf32>
    %66 = arith.mulf %57, %65 : vector<2x1xf32>
    %cst_29 = arith.constant 9.765625E-4 : f32
    %67 = vector.broadcast %cst_29 : f32 to vector<2x1xf32>
    %68 = arith.mulf %64, %67 : vector<2x1xf32>
    %69 = arith.mulf %66, %66 : vector<2x1xf32>
    %70 = arith.subf %68, %69 : vector<2x1xf32>
    %cst_30 = arith.constant 9.99999974E-6 : f32
    %71 = vector.broadcast %cst_30 : f32 to vector<2x1xf32>
    %72 = arith.addf %70, %71 : vector<2x1xf32>
    %73 = math.rsqrt %72 : vector<2x1xf32>
    %74 = tpu.concatenate %66, %66, %66, %66 in 0 : vector<2x1xf32>, vector<2x1xf32>, vector<2x1xf32>, vector<2x1xf32> -> vector<8x1xf32>
    %75 = tpu.concatenate %73, %73, %73, %73 in 0 : vector<2x1xf32>, vector<2x1xf32>, vector<2x1xf32>, vector<2x1xf32> -> vector<8x1xf32>
    %76 = vector.broadcast %74 : vector<8x1xf32> to vector<8x256xf32>
    %77 = arith.subf %45, %76 : vector<8x256xf32>
    %78 = vector.broadcast %75 : vector<8x1xf32> to vector<8x256xf32>
    %79 = arith.mulf %77, %78 : vector<8x256xf32>
    %cst_31 = arith.constant 0.000000e+00 : f32
    %80 = vector.broadcast %cst_31 : f32 to vector<8x256xf32>
    %81 = arith.maximumf %79, %80 : vector<8x256xf32>
    %c0_32 = arith.constant 0 : index
    %c0_33 = arith.constant 0 : index
    %c0_34 = arith.constant 0 : index
    %82 = vector.load %arg3[%c0_32, %c0_33, %c0_34] : memref<1x8x256xf32, #tpu.memory_space<vmem>>, vector<1x8x256xf32>
    %83 = vector.shape_cast %82 : vector<1x8x256xf32> to vector<8x256xf32>
    %84 = vector.shape_cast %81 : vector<8x256xf32> to vector<1x8x256xf32>
    tpu.vector_store %arg3[%c0_32, %c0_33, %c0_34], %84 {strides = array<i32>} : memref<1x8x256xf32, #tpu.memory_space<vmem>>, vector<1x8x256xf32>,
    return
  }
  func.func @transform_0(%arg0: i32) -> (i32, i32, i32) {
    %c0_i32 = arith.constant 0 : i32
    %c0_i32_0 = arith.constant 0 : i32
    %c0_i32_1 = arith.constant 0 : i32
    return %arg0, %c0_i32, %c0_i32_0 : i32, i32, i32
  }
  func.func @transform_1(%arg0: i32) -> (i32, i32, i32) {
    %c0_i32 = arith.constant 0 : i32
    %c0_i32_0 = arith.constant 0 : i32
    %c0_i32_1 = arith.constant 0 : i32
    %c0_i32_2 = arith.constant 0 : i32
    return %c0_i32, %c0_i32_0, %c0_i32_1 : i32, i32, i32
  }
  func.func @transform_2(%arg0: i32) -> (i32, i32, i32) {
    %c0_i32 = arith.constant 0 : i32
    %c0_i32_0 = arith.constant 0 : i32
    %c0_i32_1 = arith.constant 0 : i32
    return %arg0, %c0_i32, %c0_i32_0 : i32, i32, i32
  }
}

</mosaic_0001>

<bundles_post_ra>
// kernel: tpu_custom_call.1
= control target key start
LH: loop header
LB: loop body
LE: loop exit
PB: predicated region body
PF: predicated region fallthrough
CT: control target
= control target key end

     0   :  { %7 = vsyncpa [#allocation3], 0  ;;  %s900_s0 = inlined_call_operand.vmem [shape: f32[2,4,384], index: 0, kind: input, shape index: {}]   ;;  %s901_s1 = inlined_call_operand.vmem [shape: f32[4,8,4], index: 1, kind: input, shape index: {}]   ;;  %s902_s2 = inlined_call_operand.hbm [shape: f32[2,8,256], index: 2, kind: output, shape index: {}]  }
   0x1   :  { %9 = vsyncpa [#allocation3 + $0x1], 0  ;;  %s759_s9 = smov 0   ;;  %s761_s10 = smov 0  }
   0x2   :  { %s763_s11 = smov 0   ;;  %s765_s12 = smov 0  }
   0x3 LB: > { %s780_s13 = sadd.s32 4294967295, %s738_s12   ;;  %s597_s14 = sadd.s32 4294967294, %s738_s12   ;;  %s738_s12 = sphi %s765_s12, %s910_s12   ;;  %s734_s11 = sphi %s763_s11, %s909_s11   ;;  %s730_s10 = sphi %s761_s10, %s908_s10   ;;  %s726_s9 = sphi %s759_s9, %s907_s9  }
   0x4   : > { %s784_s15 = sadd.s32 1, %s738_s12   ;;  %s69_s16 = sadd.s32 1, %s734_s11 }
   0x5   : > { %s66_s17 = ssub.s32 %s738_s12, %s784_s15  ;;  %p79_p0 = scmp.ne.s32.totalorder %s734_s11, %s730_s10 }
   0x6   : > { %p67_p1 = scmp.eq.s32.totalorder %s66_s17, 0  ;;  %p80_p2 = scmp.eq.s32.totalorder %s780_s13, 1 }
   0x7   : > { %p85_p3 = scmp.ne.s32.totalorder %s730_s10, %s726_s9  ;;  %p86_p4 = scmp.eq.s32.totalorder %s597_s14, 1 }
   0x8   : > { %s795_s18 = scalar_select %p67_p1, %s734_s11, %s69_s16  }
   0x9   : > { %p797_p5 = por %p80_p2, %p79_p0  ;;  %p801_p6 = por %p86_p4, %p85_p3 }
   0xa   : > { %p600_p7 = scmp.ge.s32.totalorder %s738_s12, 1  ;;  %p115_p8 = scmp.lt.s32.totalorder %s738_s12, 3 }
   0xc   : > { %p116_p9 = pnand %p600_p7, %p115_p8 }
   0xd   : > { %p137_p10 = scmp.lt.s32.totalorder (!%p116_p9), %s780_s13, 1  ;;  %s740_s26 = smov (!%p116_p9), 127  }
   0xe   : > { %119 = sbr.rel (%p116_p9) target bundleno = 562 (0x232), region = 28  ;;  %s741_s27 = smov (!%p116_p9), 111  }
   0xf   : > { %s742_s28 = smov (!%p116_p9), 112   ;;  %s134_s14 = sand.u32 (!%p116_p9), 1, %s730_s10  }
  0x10   : > { %s601_s16 = sshll.u32 (!%p116_p9), %s134_s14, 4  ;;  %s627_s17 = sshll.u32 (!%p116_p9), %s780_s13, 4 }
  0x11   : > { %s533_s23 = scalar_lea.hbm (!%p116_p9), %s902_s2, %s627_s17  ;;  %s136_s24 = scalar_lea.vmem (!%p116_p9), [#allocation2], %s601_s16 }
  0x12   : > { %s696_s3 = scalar_lea.hbm (!%p116_p9), %s902_s2, 32 }
  0x13   : > { %s138_s21 = scalar_select %p137_p10, %s780_s13, 1  ;;  %v145_v13 = vlaneseq  ;;  %vm221_vm0 = vcmask 1043456   ;;  %v214_v15 = vld [vmem:[%s901_s1] sm:$0xff]  ;;  %vm217_vm1 = vcmask 31744   ;;  %vm207_vm2 = vcmask 908288   ;;  %v617_v22 = vld [vmem:[%s901_s1 + $0x18] sm:$0xff] }
  0x14   : > { %vm188_vm4 = vcmask 1039360   ;;  %v603_v31 = vld [vmem:[%s901_s1 + $0x8] sm:$0xff]  ;;  %vm333_vm6 = vcmask 916480   ;;  %v612_v39 = vld [vmem:[%s901_s1 + $0x10] sm:$0xff]  ;;  %v743_v60 = vmov 0   ;;  %vm488_vm7 = vcmask 1041408  }
  0x15   : > { %s628_s22 = smul.u32 12, %s138_s21  ;;  %v146_v14 = vand.u32 127, %v145_v13  ;;  %672 = vset.pattern.permute.xlu2 %v743_v60  ;;  %673 = vset.pattern.permute.xlu0 %v743_v60  ;;  %vm491_vm8 = vcmask 1045504   ;;  %s522_s13 = scalar_lea.sflag [#allocation3], %s134_s14 }
  0x17   : > { %s141_s25 = scalar_lea.vmem %s900_s0, %s628_s22  ;;  %v147_v16 = vadd.s32 128, %v146_v14  ;;  %v152_v26 = vand.u32 15, %v146_v14 }
  0x18   : > { %v144_v0 = vld [vmem:[%s141_s25 + $0x8] sm:$0xf]  ;;  %v142_v1 = vld [vmem:[%s141_s25] sm:$0xff]  ;;  %s535_s25 = sshll.u32 %s136_s24, 4  ;;  %s536_s25 = int_to_ptr.vmem [resolvable:$true] %s535_s25 }
  0x19   : > { %178 = vst [vmem:[#allocation1 + $0x10] ss:$2 sm:$0xff] %v144_v0  ;;  %v159_v18 = vand.u32 15, %v147_v16  ;;  %vm172_vm5 = vcmp.ne.s32.totalorder %v152_v26, 15 }
  0x1a   : > { %176 = vst [vmem:[#allocation1] ss:$2 sm:$0xff] %v142_v1 }
  0x1b   : > { %vm819_vm3 = vcmp.ne.s32.totalorder %v159_v18, 15 }
  0x20   : > { %v181_v2 = vld.sshfl [vmem:[#allocation1 + $0x10] sm:$0xff pattern:$0x75316420] }
  0x21   : > { %186 = vrot.lane.b32.xlu1 %v181_v2, %s740_s26  ;;  %197 = vst [vmem:[#allocation1 + $0x10] ss:$2 sm:$0xff] %v144_v0  ;;  %v179_v3 = vld.sshfl [vmem:[#allocation1] sm:$0xff pattern:$0x75316420] }
  0x22   : > { %182 = vrot.lane.b32.xlu0 %v179_v3, %s740_s26  ;;  %v180_v4 = vld.sshfl [vmem:[#allocation1 + $0x8] sm:$0xff pattern:$0x75316420] }
  0x23   : > { %195 = vst [vmem:[#allocation1] ss:$2 sm:$0xff] %v142_v1 }
  0x28   : > { %v200_v5 = vld.sshfl [vmem:[#allocation1 + $0x10] sm:$0xff pattern:$0x75316420] }
  0x29   : > { %323 = vst [vmem:[#allocation1 + $0x10] ss:$2 sm:$0xff] %v144_v0 }
  0x2a   : > { %184 = vrot.lane.b32.xlu0 %v180_v4, %s740_s26  ;;  %v198_v6 = vld.sshfl [vmem:[#allocation1] sm:$0xff pattern:$0x75316420]  ;;  %v199_v7 = vld.sshfl [vmem:[#allocation1 + $0x8] sm:$0xff pattern:$0x75316420] }
  0x2b   : > { %201 = vrot.lane.b32.xlu1 %v198_v6, %s741_s27  ;;  %203 = vrot.lane.b32.xlu2 %v199_v7, %s741_s27  ;;  %269 = vst [vmem:[#allocation1] ss:$2 sm:$0xff] %v142_v1  ;;  %s537_s26 = sshll.u32 %s533_s23, 4  ;;  %s538_s26 = int_to_ptr.hbm [resolvable:$true] %s537_s26 }
  0x30   : > { %v326_v10 = vld.sshfl [vmem:[#allocation1 + $0x10] sm:$0xff pattern:$0x75316420] }
  0x32   : > { %v270_v8 = vld.sshfl [vmem:[#allocation1] sm:$0xff pattern:$0x75316420]  ;;  %v271_v9 = vld.sshfl [vmem:[#allocation1 + $0x8] sm:$0xff pattern:$0x75316420] }
  0x33   : > { %321 = vst [vmem:[#allocation1] ss:$2 sm:$0xff] %v142_v1  ;;  %205 = vrot.lane.b32.xlu2 %v200_v5, %s741_s27  ;;  %608 = vmatpush.msk.msra.mxu2 %vm221_vm0, %v270_v8  ;;  %s690_s27 = sshra.s32 %s538_s26, 4  ;;  %s691_s27 = int_to_ptr.hbm [resolvable:$true] %s690_s27 }
  0x34   : > { %610 = vmatpush.msk.msra.mxu3 %vm221_vm0, %v271_v9  ;;  %609 = vmatmul.msk.f32.vlgmr.msra.gmra.mxu2 %vm217_vm1, %v214_v15  ;;  %p697_p0 = scmp.lt.s32.totalorder %s691_s27, %s902_s2 }
  0x35   : > { %611 = vmatmul.msk.f32.vlgmr.msra.gmra.mxu3 %vm217_vm1, %v214_v15 }
  0x3a   : > { %v325_v11 = vld.sshfl [vmem:[#allocation1 + $0x8] sm:$0xff pattern:$0x75316420]  ;;  %v324_v12 = vld.sshfl [vmem:[#allocation1] sm:$0xff pattern:$0x75316420] }
  0x3b   : > { %329 = vrot.lane.b32.xlu1 %v325_v11, %s742_s28  ;;  %327 = vrot.lane.b32.xlu0 %v324_v12, %s742_s28 }
  0x3c   : > { %331 = vrot.lane.b32.xlu2 %v326_v10, %s742_s28  ;;  %s692_s28 = scalar_lea.hbm %s691_s27, 16 }
  0x3d   : > { %p693_p11 = scmp.ne.s32.totalorder %s691_s27, %s692_s28  ;;  %p698_p1 = scmp.lt.s32.totalorder %s696_s3, %s692_s28 }
  0x3f   : > { %p694_p12 = pnand %p693_p11, %p797_p5  ;;  %p699_p2 = por %p698_p1, %p697_p0 }
  0x41   : > { %p695_p13 = pneg %p694_p12 }
  0x43   : > { %p700_p3 = pnand %p699_p2, %p695_p13 }
  0x85   : > { %v204_v17 = vpop.permute.xlu2 %203 }
  0x8d   : > { %v206_v20 = vpop.permute.xlu2 %205 }
  0x8e   : > { %v209_v21 = vsel %vm207_vm2, %v204_v17, %v206_v20 }
  0x8f   : > { %v213_v23 = vsel %vm819_vm3, %v209_v21, 0.0 }
  0x90   : > { %620 = vmatpush.msk.msrb.mxu3 %vm221_vm0, %v213_v23 }
  0x91   : > { %621 = vmatmul.msk.f32.vlgmr.msrb.gmra.mxu3 %vm217_vm1, %v617_v22 }
  0x93   : > { %v187_v24 = vpop.permute.xlu1 %186 }
  0x94   : > { %v183_v25 = vpop.permute.xlu0 %182 }
  0x96   : > { %v332_v36 = vpop.permute.xlu2 %331 }
  0x9c   : > { %v185_v27 = vpop.permute.xlu0 %184 }
  0x9d   : > { %v202_v28 = vpop.permute.xlu1 %201  ;;  %v189_v29 = vsel %vm188_vm4, %v183_v25, %v185_v27  ;;  %v190_v30 = vsel %vm188_vm4, %v185_v27, %v187_v24 }
  0x9e   : > { %v208_v32 = vsel %vm207_vm2, %v202_v28, %v204_v17  ;;  %v193_v33 = vsel %vm172_vm5, %v189_v29, 0.0  ;;  %v194_v34 = vsel %vm819_vm3, %v190_v30, 0.0 }
  0x9f   : > { %604 = vmatpush.msk.msra.mxu0 %vm221_vm0, %v193_v33  ;;  %606 = vmatpush.msk.msra.mxu1 %vm221_vm0, %v194_v34  ;;  %v212_v35 = vsel %vm172_vm5, %v208_v32, 0.0 }
  0xa0   : > { %618 = vmatpush.msk.msrb.mxu2 %vm221_vm0, %v212_v35  ;;  %605 = vmatmul.msk.f32.vlgmr.msra.gmra.mxu0 %vm217_vm1, %v603_v31 }
  0xa1   : > { %607 = vmatmul.msk.f32.vlgmr.msra.gmra.mxu1 %vm217_vm1, %v603_v31  ;;  %619 = vmatmul.msk.f32.vlgmr.msrb.gmra.mxu2 %vm217_vm1, %v617_v22 }
  0xad   : > { %v330_v37 = vpop.permute.xlu1 %329  ;;  %v328_v38 = vpop.permute.xlu0 %327 }
  0xae   : > { %v334_v40 = vsel %vm333_vm6, %v328_v38, %v330_v37  ;;  %v335_v41 = vsel %vm333_vm6, %v330_v37, %v332_v36 }
  0xaf   : > { %613 = vmatpush.msk.msrb.mxu0 %vm221_vm0, %v334_v40  ;;  %615 = vmatpush.msk.msrb.mxu1 %vm221_vm0, %v335_v41 }
  0xb0   : > { %614 = vmatmul.msk.f32.vlgmr.msrb.gmra.mxu0 %vm217_vm1, %v612_v39  ;;  %616 = vmatmul.msk.f32.vlgmr.msrb.gmra.mxu1 %vm217_vm1, %v612_v39 }
  0xb7   : > { %v296_v44 = vpop.f32.mrf.mxu2 }
  0xb8   : > { %v316_v45 = vpop.f32.mrf.mxu3 }
 0x114   : > { %v433_v49 = vpop.f32.mrf.mxu3 }
 0x11d   : > { %v245_v42 = vpop.f32.mrf.mxu0 }
 0x11e   : > { %v265_v43 = vpop.f32.mrf.mxu1  ;;  %v297_v46 = vadd.f32 %v296_v44, %v245_v42 }
 0x11f   : > { %v317_v47 = vadd.f32 %v316_v45, %v265_v43 }
 0x124   : > { %v413_v48 = vpop.f32.mrf.mxu2 }
 0x12d   : > { %v360_v50 = vpop.f32.mrf.mxu0  ;;  %v380_v51 = vpop.f32.mrf.mxu1 }
 0x12e   : > { %v383_v52 = vadd.f32 %v360_v50, %v297_v46  ;;  %v384_v53 = vadd.f32 %v380_v51, %v317_v47 }
 0x130   : > { %v850_v54 = vadd.f32 %v413_v48, %v383_v52  ;;  %v852_v55 = vadd.f32 %v433_v49, %v384_v53 }
 0x132   : > { %v438_v56 = vadd.f32 %v852_v55, %v850_v54  ;;  %v441_v57 = vmul.f32 %v850_v54, %v850_v54  ;;  %v442_v58 = vmul.f32 %v852_v55, %v852_v55 }
 0x134   : > { %439 = vadd.xlane.f32.xlu0 %v438_v56  ;;  %v443_v59 = vadd.f32 %v442_v58, %v441_v57 }
 0x136   : > { %444 = vadd.xlane.f32.xlu1 %v443_v59 }
 0x1a7   : > { %v440_v61 = vpop.xlane.xlu0 %439 }
 0x1a8   : > { %v447_v62 = vrot.slane %v440_v61, 2  ;;  %v450_v1 = vrot.slane %v440_v61, 4  ;;  %v453_v4 = vrot.slane %v440_v61, 6 }
 0x1a9   : > { %v445_v63 = vpop.xlane.xlu1 %444 }
 0x1aa   : > { %v449_v0 = vadd.f32 %v447_v62, %v440_v61  ;;  %v457_v2 = vrot.slane %v445_v63, 2  ;;  %v460_v6 = vrot.slane %v445_v63, 4  ;;  %v463_v9 = vrot.slane %v445_v63, 6 }
 0x1ac   : > { %v452_v3 = vadd.f32 %v450_v1, %v449_v0  ;;  %v459_v5 = vadd.f32 %v457_v2, %v445_v63 }
 0x1ae   : > { %v455_v7 = vadd.f32 %v453_v4, %v452_v3  ;;  %v462_v8 = vadd.f32 %v460_v6, %v459_v5 }
 0x1b0   : > { %v466_v10 = vmul.f32 0.0009765625, %v455_v7  ;;  %v465_v11 = vadd.f32 %v463_v9, %v462_v8 }
 0x1b2   : > { %v467_v12 = vmul.f32 0.0009765625, %v465_v11  ;;  %v468_v13 = vmul.f32 %v466_v10, %v466_v10  ;;  %v482_v14 = vrot.slane %v466_v10, 6  ;;  %v484_v15 = vrot.slane %v466_v10, 4 }
 0x1b3   : > { %v486_v17 = vrot.slane %v466_v10, 2 }
 0x1b4   : > { %v469_v16 = vsub.f32 %v467_v12, %v468_v13  ;;  %v489_v18 = vsel %vm488_vm7, %v466_v10, %v482_v14 }
 0x1b5   : > { %v490_v19 = vsel %vm221_vm0, %v489_v18, %v484_v15 }
 0x1b6   : > { %v470_v20 = vadd.f32 1e-05, %v469_v16  ;;  %v492_v21 = vsel %vm491_vm8, %v490_v19, %v486_v17 }
 0x1b7   : > { %505 = vperm.xlu2 %672, %v492_v21  }
 0x1b8   : > { %674 = vrsqrt.f32 %v470_v20  ;;  %vm477_vm10 = vweird.f32 %v470_v20 }
 0x1be   : > { %v675_v22 = vpop.eup %674 }
 0x1bf   : > { %v472_v23 = vmul.f32 %v675_v22, %v470_v20  ;;  %vm478_vm9 = vweird.f32 %v675_v22 }
 0x1c0   : > { %vm479_vm11 = vmor %vm477_vm10, %vm478_vm9 }
 0x1c1   : > { %v473_v24 = vmul.f32 %v675_v22, %v472_v23 }
 0x1c3   : > { %v474_v25 = vmul.f32 0.5, %v473_v24 }
 0x1c5   : > { %v475_v26 = vsub.f32 1.5, %v474_v25 }
 0x1c7   : > { %v476_v27 = vmul.f32 %v675_v22, %v475_v26 }
 0x1c9   : > { %v480_v28 = vsel %vm479_vm11, %v675_v22, %v476_v27 }
 0x1ca   : > { %v494_v29 = vrot.slane %v480_v28, 6  ;;  %v496_v30 = vrot.slane %v480_v28, 4  ;;  %v498_v31 = vrot.slane %v480_v28, 2 }
 0x1cc   : > { %v500_v32 = vsel %vm488_vm7, %v480_v28, %v494_v29 }
 0x1cd   : > { %v501_v33 = vsel %vm221_vm0, %v500_v32, %v496_v30 }
 0x1ce   : > { %v502_v34 = vsel %vm491_vm8, %v501_v33, %v498_v31 }
 0x1cf   : > { %512 = vperm.xlu2 %672, %v502_v34  }
 0x211   : > { %v506_v35 = vpop.permute.xlu2 %505 }
 0x212   : > { %v508_v36 = vsub.f32 %v850_v54, %v506_v35  ;;  %v509_v37 = vsub.f32 %v852_v55, %v506_v35 }
 0x229   : > { %v513_v38 = vpop.permute.xlu2 %512 }
 0x22a   : > { %v515_v39 = vmul.f32 %v513_v38, %v508_v36  ;;  %v516_v40 = vmul.f32 %v513_v38, %v509_v37 }
 0x22c   : > { %v517_v41 = vmax.f32 %v515_v39, 0.0  ;;  %v518_v42 = vmax.f32 %v516_v40, 0.0 }
 0x22e   : > { %519 = vst [vmem:[%s136_s24] sm:$0xff] %v517_v41 }
 0x22f   : > { %520 = vst [vmem:[%s136_s24 + $0x8] sm:$0xff] %v518_v42 }
 0x230   : > { %703 = shalt.err (!%p700_p3)
}
 0x231   : > { %629 = dma.vmem_to_hbm [thread:$0]  (%p797_p5), %s536_s25, 256, %s538_s26, %s522_s13  }
 0x232 PF: > { %p635_p4 = scmp.ge.s32.totalorder %s738_s12, 2  ;;  %s549_s6 = sand.u32 1, %s726_s9  }
 0x233   : > { %s550_s7 = scalar_lea.sflag [#allocation3], %s549_s6 }
 0x234   : > { %p632_p7 = pnand %p635_p4, %p801_p6 }
 0x236   : > { %p633_p8 = pneg %p632_p7 }
 0x238   : > { %721 = dma.done.wait (%p633_p8), %s550_s7, 256  }
 0x239   : > { %723 = vsyncadd (%p633_p8), %s550_s7, 4294967040  ;;  %p12_p9 = scmp.ge.s32.totalorder %s784_s15, 4   ;;  %s907_s9 = smov %s730_s10 }
 0x23a   : > { %s908_s10 = smov %s734_s11  ;;  %s909_s11 = smov %s795_s18 }
 0x23b   : > { %s910_s12 = smov %s784_s15  ;;  %14 = sbr.rel (!%p12_p9) target bundleno = 3 (0x3), region = 69 }
 0x240   :  { %556 = vsyncpa [#allocation3], 1 }
 0x241   :  { %558 = vsyncpa [#allocation3 + $0x1], 1 }

</bundles_post_ra>
